<compile_context>
chip_gen: v7x
topology: tpu7x:2x2x1
jax: 0.10.0
libtpu: 0.0.40
codegen_flags: <defaults>
</compile_context>

<pallas_src>
import math

import jax
import jax.numpy as jnp
from jax.experimental import pallas as pl
from jax.experimental.pallas import tpu as pltpu

_VMEM_LIMIT = 32 * 1024 * 1024      # scoped VMEM limit, safe on v5e / v6e / v7x
_SUBLANE = {4: 8, 2: 16, 1: 32}     # dtype size (bytes) -> sublane alignment


# --------------------------------------------------------------------------
# Kernels (pure elementwise: VPU mul + EUP exp, f32 intermediate).
# --------------------------------------------------------------------------
def _glu_pair_kernel(a_ref, b_ref, o_ref):
    a = a_ref[...].astype(jnp.float32)
    b = b_ref[...].astype(jnp.float32)
    o_ref[...] = (a * jax.nn.sigmoid(b)).astype(o_ref.dtype)


def _glu_fused_kernel(x_ref, o_ref):
    # Fallback for small non-lane-aligned last-dim splits: split on the lane
    # axis inside the kernel.
    h = o_ref.shape[-1]
    a = x_ref[:, :h].astype(jnp.float32)
    b = x_ref[:, h:].astype(jnp.float32)
    o_ref[...] = (a * jax.nn.sigmoid(b)).astype(o_ref.dtype)


# --------------------------------------------------------------------------
# Sizing helpers.
# --------------------------------------------------------------------------
def _block_bytes():
    """Per-block VMEM target, generation-aware.

    ~4 MiB on 128 MiB-VMEM chips (v5e/v6e), ~2 MiB on 64 MiB-VMEM chips (v7x)
    to preserve headroom (3 arrays x 2 buffers well under the scoped limit).
    """
    vmem = 128 * 1024 * 1024
    try:
        info = pltpu.get_tpu_info()
        vmem = int(getattr(info, "vmem_capacity_bytes", vmem)) or vmem
    except Exception:
        pass
    return (2 if vmem <= 64 * 1024 * 1024 else 4) * 1024 * 1024


def _lane_tile(n, cap):
    """Largest lane tile <= cap; prefer a multiple of 128 that divides n."""
    if n <= cap:
        return n
    t = max(128, (cap // 128) * 128)
    cand = t
    while cand >= 128:
        if n % cand == 0:
            return cand
        cand -= 128
    return t  # non-dividing tile: Pallas masks the edge block


def _factor_slab(S, align):
    """Factor S = rows * cols with cols % 128 == 0 (lane-dense stores) and
    rows as large as possible up to the dtype sublane count (vreg packing).
    Caller guarantees S % 128 == 0."""
    r = align
    while r > 1 and S % (r * 128) != 0:
        r //= 2
    return r, S // r


def _cost(out_elems, dsize):
    # a + b reads, one write; one transcendental (exp) per output element.
    return pl.CostEstimate(
        flops=2 * out_elems,
        transcendentals=out_elems,
        bytes_accessed=3 * out_elems * dsize,
    )


def _params(n_axes):
    return pltpu.CompilerParams(
        dimension_semantics=("parallel",) * n_axes,
        vmem_limit_bytes=_VMEM_LIMIT,
    )


# --------------------------------------------------------------------------
# Main lane-dense pair path: x viewed as (lead, 2, rows, cols), cols % 128 == 0.
# Covers every split (any `dim`) whose half-slab size h*tail is a multiple of
# 128, including the NCHW dim=1 case and large last-dim splits.
# --------------------------------------------------------------------------
def _glu_pair(x4, lead, rows, cols, dsize, bb, out_elems):
    budget = max(1, bb // dsize)          # elements per block (per array)
    slab = rows * cols

    if slab <= budget:
        tc = cols
        tl = max(1, min(lead, budget // slab))
    else:
        # Large slab: tile the single long (collapsed) lane axis.
        tl = 1
        tc = _lane_tile(cols, max(128, budget // rows))

    # Megacore: guarantee >= 2 grid steps when there is enough work.
    if tl >= lead and tc >= cols:
        if lead > 1:
            tl = pl.cdiv(lead, 2)
        elif cols >= 256:
            tc = pl.cdiv(cols // 128, 2) * 128   # cols % 128 == 0

    grid = (pl.cdiv(lead, tl), pl.cdiv(cols, tc))

    a_spec = pl.BlockSpec((tl, None, rows, tc), lambda i, j: (i, 0, 0, j))
    b_spec = pl.BlockSpec((tl, None, rows, tc), lambda i, j: (i, 1, 0, j))
    o_spec = pl.BlockSpec((tl, rows, tc), lambda i, j: (i, 0, j))

    return pl.pallas_call(
        _glu_pair_kernel,
        out_shape=jax.ShapeDtypeStruct((lead, rows, cols), x4.dtype),
        grid=grid,
        in_specs=[a_spec, b_spec],
        out_specs=o_spec,
        compiler_params=_params(2),
        cost_estimate=_cost(out_elems, dsize),
    )(x4, x4)


# --------------------------------------------------------------------------
# Fallback A: mid-axis split whose slab is NOT a multiple of 128.
# View (lead, 2, h, tail); tile lead / h / tail (h kept on sublanes).
# --------------------------------------------------------------------------
def _glu_mid_fallback(x4, lead, h, tail, dsize, bb, out_elems):
    align = _SUBLANE.get(dsize, 8)
    budget = max(1, bb // dsize)

    cap = max(128, budget // align)
    tt = tail if tail <= cap else _lane_tile(tail, cap)
    th = min(h, max(1, budget // tt))
    if th < h:
        th = max(align, (th // align) * align)
    tl = max(1, min(lead, budget // max(1, th * tt)))
    if tl >= lead and th >= h and tt >= tail and lead > 1:
        tl = pl.cdiv(lead, 2)      # keep >= 2 grid steps for megacore

    grid = (pl.cdiv(lead, tl), pl.cdiv(h, th), pl.cdiv(tail, tt))

    a_spec = pl.BlockSpec((tl, None, th, tt), lambda i, j, k: (i, 0, j, k))
    b_spec = pl.BlockSpec((tl, None, th, tt), lambda i, j, k: (i, 1, j, k))
    o_spec = pl.BlockSpec((tl, th, tt), lambda i, j, k: (i, j, k))

    return pl.pallas_call(
        _glu_pair_kernel,
        out_shape=jax.ShapeDtypeStruct((lead, h, tail), x4.dtype),
        grid=grid,
        in_specs=[a_spec, b_spec],
        out_specs=o_spec,
        compiler_params=_params(3),
        cost_estimate=_cost(out_elems, dsize),
    )(x4, x4)


# --------------------------------------------------------------------------
# Last-dim split, lane-aligned half (h % 128 == 0): 2-D pair path where the
# b-half is just a lane-aligned column offset of the same array.  Keeps lead
# on the sublane axis (dense packing) and h on lanes (dense stores).
# --------------------------------------------------------------------------
def _glu_last_pair(x2, lead, h, dsize, bb, out_elems):
    align = _SUBLANE.get(dsize, 8)
    budget = max(1, bb // dsize)

    tc = _lane_tile(h, max(128, budget // align))
    if h % tc != 0:
        tc = 128                   # h % 128 == 0, so this always divides
    tr = max(align, (max(1, min(lead, budget // tc)) // align) * align)
    if tr >= lead:
        tr = lead

    # Megacore: guarantee >= 2 grid steps when there is enough work.
    if pl.cdiv(lead, tr) * (h // tc) == 1:
        if h >= 256:
            tc = 128
        elif lead >= 2 * align:
            tr = ((pl.cdiv(lead, 2) + align - 1) // align) * align

    nb = h // tc                   # b-half offset, in column blocks
    grid = (pl.cdiv(lead, tr), h // tc)

    return pl.pallas_call(
        _glu_pair_kernel,
        out_shape=jax.ShapeDtypeStruct((lead, h), x2.dtype),
        grid=grid,
        in_specs=[
            pl.BlockSpec((tr, tc), lambda i, j: (i, j)),
            pl.BlockSpec((tr, tc), lambda i, j, nb=nb: (i, j + nb)),
        ],
        out_specs=pl.BlockSpec((tr, tc), lambda i, j: (i, j)),
        compiler_params=_params(2),
        cost_estimate=_cost(out_elems, dsize),
    )(x2, x2)


# --------------------------------------------------------------------------
# Fallback B: last-dim split with small / unaligned half: whole (2h)-wide rows
# per block, split on the lane axis inside the kernel.
# --------------------------------------------------------------------------
def _glu_last_fused(x2, lead, h, dsize, bb, out_elems):
    align = _SUBLANE.get(dsize, 8)
    budget = max(1, bb // dsize)

    # TODO(synk): tile the h axis for extremely large, non-128-aligned
    # last-dim splits (currently the whole 2h row is one block).
    tr = max(align, ((budget // max(1, 2 * h)) // align) * align)
    if tr >= lead:
        tr = lead
    if tr >= lead and lead >= 2 * align:
        tr = ((pl.cdiv(lead, 2) + align - 1) // align) * align  # >= 2 steps

    grid = (pl.cdiv(lead, tr),)
    return pl.pallas_call(
        _glu_fused_kernel,
        out_shape=jax.ShapeDtypeStruct((lead, h), x2.dtype),
        grid=grid,
        in_specs=[pl.BlockSpec((tr, 2 * h), lambda i: (i, 0))],
        out_specs=pl.BlockSpec((tr, h), lambda i: (i, 0)),
        compiler_params=_params(1),
        cost_estimate=_cost(out_elems, dsize),
    )(x2)


# --------------------------------------------------------------------------
# Public entry point.
# --------------------------------------------------------------------------
def glu_pallas(x, dim):
    """Pallas TPU implementation of torch.nn.functional.glu(x, dim)."""
    dim = dim % x.ndim
    if x.shape[dim] % 2 != 0:
        raise ValueError("GLU split dimension must be even")

    shape = x.shape
    lead = math.prod(shape[:dim])          # 1 if dim == 0
    h = shape[dim] // 2
    tail = math.prod(shape[dim + 1:])      # 1 if dim is the last axis
    slab = h * tail                        # per-(lead-row, half) contiguous slab
    dsize = x.dtype.itemsize
    align = _SUBLANE.get(dsize, 8)
    bb = _block_bytes()
    out_shape = shape[:dim] + (h,) + shape[dim + 1:]
    out_elems = lead * slab

    if slab % 128 == 0 and tail > 1:
        # Lane-dense collapsed slab view (lead, 2, rows, cols), cols % 128 == 0.
        rows, cols = _factor_slab(slab, align)
        out = _glu_pair(x.reshape(lead, 2, rows, cols),
                        lead, rows, cols, dsize, bb, out_elems)
    elif tail > 1:
        out = _glu_mid_fallback(x.reshape(lead, 2, h, tail),
                                lead, h, tail, dsize, bb, out_elems)
    elif h % 128 == 0:
        out = _glu_last_pair(x.reshape(lead, 2 * h),
                             lead, h, dsize, bb, out_elems)
    else:
        out = _glu_last_fused(x.reshape(lead, 2 * h),
                              lead, h, dsize, bb, out_elems)
    return out.reshape(out_shape)


if __name__ == "__main__":
    key = jax.random.PRNGKey(0)
    k0, k1, k2, k3, k4 = jax.random.split(key, 5)

    # 1) NCHW input, GLU over channels (main lane-dense pair path).
    x = jax.random.normal(k0, (2, 8, 16, 16), dtype=jnp.float32)
    out = jax.block_until_ready(glu_pallas(x, dim=1))
    a, b = jnp.split(x, 2, axis=1)
    ref = a * jax.nn.sigmoid(b)
    assert out.shape == (2, 4, 16, 16)
    assert jnp.allclose(out, ref, atol=1e-6, rtol=1e-6)

    # 1b) same path in bf16 (dtype-aware tiling, f32 in-kernel compute).
    xb = jax.random.normal(k1, (2, 8, 16, 16), dtype=jnp.bfloat16)
    outb = jax.block_until_ready(glu_pallas(xb, dim=1))
    ab, bb_ = jnp.split(xb, 2, axis=1)
    refb = ab * jax.nn.sigmoid(bb_)
    assert outb.shape == (2, 4, 16, 16)
    assert jnp.allclose(outb.astype(jnp.float32), refb.astype(jnp.float32),
                        atol=1e-2, rtol=1e-2)

    # 2) last-dim split, lane-aligned half (2-D pair path).
    x2 = jax.random.normal(k2, (64, 256), dtype=jnp.float32)
    out2 = jax.block_until_ready(glu_pallas(x2, dim=-1))
    a2, b2 = jnp.split(x2, 2, axis=-1)
    assert jnp.allclose(out2, a2 * jax.nn.sigmoid(b2), atol=1e-6, rtol=1e-6)

    # 3) last-dim split, small / unaligned half (fused fallback path).
    x3 = jax.random.normal(k3, (2, 8, 16, 16), dtype=jnp.float32)
    out3 = jax.block_until_ready(glu_pallas(x3, dim=-1))
    a3, b3 = jnp.split(x3, 2, axis=-1)
    assert out3.shape == (2, 8, 16, 8)
    assert jnp.allclose(out3, a3 * jax.nn.sigmoid(b3), atol=1e-6, rtol=1e-6)

    # 4) mid split whose slab is not a multiple of 128 (mid fallback path).
    x4 = jax.random.normal(k4, (2, 6, 15, 15), dtype=jnp.float32)
    out4 = jax.block_until_ready(glu_pallas(x4, dim=1))
    a4, b4 = jnp.split(x4, 2, axis=1)
    assert out4.shape == (2, 3, 15, 15)
    assert jnp.allclose(out4, a4 * jax.nn.sigmoid(b4), atol=1e-6, rtol=1e-6)

    print("KERNEL_OK")
</pallas_src>

<mosaic_0001>
module attributes {stable_mosaic.version = 11 : i64} {
  func.func @_glu_pair_kernel(%arg0: i32, %arg1: i32, %arg2: memref<1x1x8x128xf32, #tpu.memory_space<vmem>>, %arg3: memref<1x1x8x128xf32, #tpu.memory_space<vmem>>, %arg4: memref<1x8x128xf32, #tpu.memory_space<vmem>>) attributes {dimension_semantics = [#tpu.dimension_semantics<parallel>, #tpu.dimension_semantics<parallel>], iteration_bounds = array<i64: 2, 1>, scalar_prefetch = 0 : i64, scratch_operands = 0 : i64, tpu.core_type = #tpu.core_type<tc>, window_params = [{transform_indices = @transform_0, window_bounds = array<i64: 1, 1, 8, 128>}, {transform_indices = @transform_1, window_bounds = array<i64: 1, 1, 8, 128>}, {transform_indices = @transform_2, window_bounds = array<i64: 1, 8, 128>}]} {
    %c0 = arith.constant 0 : index
    %c0_0 = arith.constant 0 : index
    %c0_1 = arith.constant 0 : index
    %c0_2 = arith.constant 0 : index
    %0 = vector.load %arg2[%c0, %c0_0, %c0_1, %c0_2] : memref<1x1x8x128xf32, #tpu.memory_space<vmem>>, vector<1x1x8x128xf32>
    %1 = vector.shape_cast %0 : vector<1x1x8x128xf32> to vector<1x8x128xf32>
    %c0_3 = arith.constant 0 : index
    %c0_4 = arith.constant 0 : index
    %c0_5 = arith.constant 0 : index
    %c0_6 = arith.constant 0 : index
    %2 = vector.load %arg3[%c0_3, %c0_4, %c0_5, %c0_6] : memref<1x1x8x128xf32, #tpu.memory_space<vmem>>, vector<1x1x8x128xf32>
    %3 = vector.shape_cast %2 : vector<1x1x8x128xf32> to vector<1x8x128xf32>
    %4 = arith.negf %3 : vector<1x8x128xf32>
    %5 = math.exp %4 : vector<1x8x128xf32>
    %cst = arith.constant 1.000000e+00 : f32
    %6 = vector.broadcast %cst : f32 to vector<1x8x128xf32>
    %7 = arith.addf %6, %5 : vector<1x8x128xf32>
    %8 = arith.divf %6, %7 : vector<1x8x128xf32>
    %9 = arith.mulf %1, %8 : vector<1x8x128xf32>
    %c0_7 = arith.constant 0 : index
    %c0_8 = arith.constant 0 : index
    %c0_9 = arith.constant 0 : index
    %10 = vector.load %arg4[%c0_7, %c0_8, %c0_9] : memref<1x8x128xf32, #tpu.memory_space<vmem>>, vector<1x8x128xf32>
    tpu.vector_store %arg4[%c0_7, %c0_8, %c0_9], %9 {strides = array<i32>} : memref<1x8x128xf32, #tpu.memory_space<vmem>>, vector<1x8x128xf32>,
    return
  }
  func.func @transform_0(%arg0: i32, %arg1: i32) -> (i32, i32, i32, i32) {
    %c0_i32 = arith.constant 0 : i32
    %c0_i32_0 = arith.constant 0 : i32
    %c0_i32_1 = arith.constant 0 : i32
    return %arg0, %c0_i32, %c0_i32_0, %arg1 : i32, i32, i32, i32
  }
  func.func @transform_1(%arg0: i32, %arg1: i32) -> (i32, i32, i32, i32) {
    %c1_i32 = arith.constant 1 : i32
    %c0_i32 = arith.constant 0 : i32
    %c0_i32_0 = arith.constant 0 : i32
    return %arg0, %c1_i32, %c0_i32, %arg1 : i32, i32, i32, i32
  }
  func.func @transform_2(%arg0: i32, %arg1: i32) -> (i32, i32, i32) {
    %c0_i32 = arith.constant 0 : i32
    %c0_i32_0 = arith.constant 0 : i32
    return %arg0, %c0_i32, %arg1 : i32, i32, i32
  }
}

</mosaic_0001>

<bundles_post_ra>
// kernel: tpu_custom_call.1
= control target key start
LH: loop header
LB: loop body
LE: loop exit
PB: predicated region body
PF: predicated region fallthrough
CT: control target
= control target key end

     0   :  { %7 = vsyncpa [#allocation3], 0  ;;  %s829_s0 = inlined_call_operand.hbm [shape: f32[2,2,8,128], index: 0, kind: input, shape index: {}]   ;;  %s830_s1 = inlined_call_operand.hbm [shape: f32[2,2,8,128], index: 1, kind: input, shape index: {}]   ;;  %s831_s2 = inlined_call_operand.hbm [shape: f32[2,8,128], index: 2, kind: output, shape index: {}]  }
   0x1   :  { %9 = vsyncpa [#allocation3 + $0x1], 0 }
   0x2   :  { %10 = vsyncpa [#allocation6], 0 }
   0x3   :  { %12 = vsyncpa [#allocation6 + $0x1], 0 }
   0x4   :  { %13 = vsyncpa [#allocation4], 0 }
   0x5   :  { %15 = vsyncpa [#allocation4 + $0x1], 0  ;;  %s610_s9 = smov 0   ;;  %s612_s10 = smov 0  }
   0x6   :  { %s614_s11 = smov 0   ;;  %s616_s12 = smov 0  }
   0x7   :  { %s618_s13 = smov 0   ;;  %s620_s14 = smov 0  }
   0x8 LB: > { %s351_s15 = sadd.s32 4294967295, %s590_s14   ;;  %s352_s16 = sadd.s32 4294967294, %s590_s14   ;;  %s590_s14 = sphi %s620_s14, %s21_s14   ;;  %s586_s13 = sphi %s618_s13, %s851_s13   ;;  %s582_s12 = sphi %s616_s12, %s850_s12   ;;  %s578_s11 = sphi %s614_s11, %s849_s11   ;;  %s574_s10 = sphi %s612_s10, %s848_s10   ;;  %s570_s9 = sphi %s610_s9, %s847_s9  }
   0x9   : > { %s33_s17 = sadd.s32 1, %s586_s13  ;;  %s42_s18 = sadd.s32 1, %s578_s11 }
   0xa   : > { %p35_p0 = scmp.ge.s32.totalorder %s33_s17, 2  ;;  %p49_p1 = scmp.ne.s32.totalorder %s578_s11, %s574_s10 }
   0xb   : > { %p50_p2 = scmp.eq.s32.totalorder %s590_s14, 0  ;;  %p55_p3 = scmp.ne.s32.totalorder %s574_s10, %s570_s9 }
   0xc   : > { %s853_s17 = smov (%p35_p0, %s33_s17), 0  ;;  %p56_p5 = scmp.eq.s32.totalorder %s351_s15, 0 }
   0xd   : > { %p651_p4 = por %p50_p2, %p49_p1  ;;  %s37_s20 = ssub.s32 %s586_s13, %s853_s17 }
   0xe   : > { %p109_p6 = scmp.eq.s32.totalorder %s351_s15, 1  ;;  %p40_p7 = scmp.eq.s32.totalorder %s37_s20, 0 }
   0xf   : > { %p657_p8 = por %p56_p5, %p55_p3  ;;  %p115_p10 = scmp.eq.s32.totalorder %s352_s16, 1 }
  0x10   : > { %p661_p9 = por %p109_p6, %p49_p1  ;;  %p389_p13 = scmp.lt.s32.totalorder %s590_s14, 2 }
  0x11   : > { %s835_s21 = scalar_select %p657_p8, 1, 0 }
  0x12   : > { %s836_s22 = scalar_select %p661_p9, 1, 0 }
  0x13   : > { %s666_s23 = scalar_select %p40_p7, %s578_s11, %s42_s18  }
  0x14   : > { %p668_p11 = por %p115_p10, %p55_p3  ;;  %s675_s25 = sand.u32 1, %s578_s11  }
  0x15   : > { %s355_s26 = sshll.u32 %s675_s25, 3  ;;  %s370_s27 = sshll.u32 %s586_s13, 8 }
  0x16   : > { %s837_s24 = scalar_select %p668_p11, 1, 0 }
  0x17   : > { %s684_s30 = scalar_lea.hbm %s829_s0, %s370_s27  ;;  %s139_s3 = scalar_lea.vmem [#allocation2], %s355_s26 }
  0x18   : > { %s148_s4 = sshll.u32 %s139_s3, 4  ;;  %p692_p0 = pnand %p389_p13, %p651_p4  ;;  %s688_s4 = int_to_ptr.vmem [resolvable:$true] %s148_s4 }
  0x19   : > { %s136_s6 = scalar_lea.sflag [#allocation3], %s675_s25  ;;  %s443_s7 = scalar_lea.hbm %s684_s30, 128 }
  0x1a   : > { %p444_p3 = scmp.ne.s32.totalorder %s684_s30, %s443_s7  ;;  %p445_p5 = pneg %p692_p0 }
  0x1b   : > { %s448_s16 = scalar_lea.hbm %s829_s0, 512  ;;  %p449_p4 = scmp.lt.u32.totalorder %s684_s30, %s829_s0 }
  0x1c   : > { %p446_p6 = pnand %p445_p5, %p444_p3  ;;  %p450_p10 = scmp.lt.u32.totalorder %s448_s16, %s443_s7 }
  0x1d   : > { %p452_p12 = scmp.lt.u32.totalorder %s443_s7, %s684_s30 }
  0x1e   : > { %p447_p7 = pneg %p446_p6  ;;  %p451_p13 = por %p450_p10, %p449_p4 }
  0x20   : > { %p453_p1 = por %p452_p12, %p451_p13 }
  0x22   : > { %p454_p2 = pnand %p453_p1, %p447_p7 }
  0x24   : > { %457 = shalt.err (!%p454_p2)
}
  0x25   : > { %s458_s20 = scalar_lea.vmem %s688_s4, 128  ;;  %s592_s28 = smov [#allocation2]  }
  0x26   : > { %p459_p3 = scmp.ne.s32.totalorder %s688_s4, %s458_s20  ;;  %s463_s29 = sshll.u32 %s592_s28, 4  ;;  %s464_s29 = int_to_ptr.vmem [resolvable:$false] %s463_s29 }
  0x27   : > { %s465_s3 = scalar_lea.vmem %s464_s29, 256  ;;  %p466_p9 = scmp.lt.s32.totalorder %s688_s4, %s464_s29 }
  0x28   : > { %p461_p6 = pnand %p459_p3, %p445_p5  ;;  %p467_p4 = scmp.lt.s32.totalorder %s465_s3, %s458_s20 }
  0x2a   : > { %p462_p11 = pneg %p461_p6  ;;  %p468_p10 = por %p467_p4, %p466_p9 }
  0x2c   : > { %p469_p12 = pnand %p468_p10, %p462_p11 }
  0x2e   : > { %472 = shalt.err (!%p469_p12)
}
  0x2f   : > { %381 = dma.hbm_to_vmem [thread:$0]  (!%p692_p0), %s684_s30, 128, %s688_s4, %s136_s6  }
  0x30   : > { %p839_p1 = scmp.lt.s32.totalorder %s590_s14, 3  ;;  %p840_p2 = scmp.ge.s32.totalorder %s590_s14, 1 }
  0x31   : > { %s284_s16 = scalar_lea.hbm %s830_s1, %s370_s27  ;;  %s159_s18 = scalar_lea.vmem [#allocation5], %s355_s26 }
  0x32   : > { %p728_p7 = pnand %p840_p2, %p839_p1  ;;  %s169_s19 = sshll.u32 %s159_s18, 4  ;;  %s170_s19 = int_to_ptr.vmem [resolvable:$true] %s169_s19 }
  0x33   : > { %s739_s20 = scalar_lea.hbm %s284_s16, 128  ;;  %s156_s30 = scalar_lea.sflag [#allocation6], %s675_s25 }
  0x34   : > { %s841_s7 = scalar_select %p728_p7, 1, 0 }
  0x35   : > { %s503_s4 = scalar_lea.hbm %s284_s16, 256  ;;  %s478_s27 = scalar_lea.hbm %s830_s1, 512 }
  0x36   : > { %p474_p9 = scmp.ne.s32.totalorder %s739_s20, %s503_s4  ;;  %p479_p3 = scmp.lt.u32.totalorder %s739_s20, %s830_s1 }
  0x37   : > { %p480_p6 = scmp.lt.u32.totalorder %s478_s27, %s503_s4  ;;  %p482_p10 = scmp.lt.u32.totalorder %s503_s4, %s739_s20 }
  0x38   : > { %p476_p11 = pnand %p474_p9, %p445_p5 }
  0x39   : > { %p481_p4 = por %p480_p6, %p479_p3 }
  0x3a   : > { %p477_p13 = pneg %p476_p11 }
  0x3b   : > { %p483_p12 = por %p482_p10, %p481_p4 }
  0x3d   : > { %p484_p1 = pnand %p483_p12, %p477_p13 }
  0x3f   : > { %487 = shalt.err (!%p484_p1)
}
  0x40   : > { %s488_s25 = scalar_lea.vmem %s170_s19, 128  ;;  %s593_s3 = smov [#allocation5]  }
  0x41   : > { %p489_p2 = scmp.ne.s32.totalorder %s170_s19, %s488_s25  ;;  %s493_s8 = sshll.u32 %s593_s3, 4  ;;  %s494_s8 = int_to_ptr.vmem [resolvable:$false] %s493_s8 }
  0x42   : > { %s495_s15 = scalar_lea.vmem %s494_s8, 256  ;;  %p496_p8 = scmp.lt.s32.totalorder %s170_s19, %s494_s8 }
  0x43   : > { %p491_p9 = pnand %p489_p2, %p445_p5  ;;  %p497_p7 = scmp.lt.s32.totalorder %s495_s15, %s488_s25 }
  0x45   : > { %p492_p11 = pneg %p491_p9  ;;  %p498_p3 = por %p497_p7, %p496_p8 }
  0x47   : > { %p499_p6 = pnand %p498_p3, %p492_p11 }
  0x49   : > { %502 = shalt.err (!%p499_p6)
}
  0x4a   : > { %384 = dma.hbm_to_vmem [thread:$0]  (!%p692_p0), %s739_s20, 128, %s170_s19, %s156_s30  }
  0x4b   : > { %p842_p13 = scmp.ne.s32.totalorder %s841_s7, 0 }
  0x4c   : > { %s763_s16 = sand.u32 (!%p842_p13), 1, %s574_s10   ;;  %p843_p5 = scmp.ne.s32.totalorder (!%p842_p13), %s835_s21, 0 }
  0x4d   : > { %178 = sbr.rel (%p842_p13) target bundleno = 130 (0x82), region = 28  ;;  %s362_s18 = sshll.u32 (!%p842_p13), %s763_s16, 3 }
  0x4e   : > { %s181_s4 = scalar_lea.sflag (!%p842_p13), [#allocation3], %s763_s16  ;;  %s184_s6 = scalar_lea.vmem (!%p842_p13), [#allocation2], %s362_s18 }
  0x54   : > { %557 = dma.done.wait (%p843_p5), %s181_s4, 128  }
  0x55   : > { %559 = vsyncadd (%p843_p5), %s181_s4, 4294967168  ;;  %s190_s5 = scalar_lea.sflag [#allocation6], %s763_s16  ;;  %s193_s19 = scalar_lea.vmem [#allocation5], %s362_s18 }
  0x56   : > { %561 = dma.done.wait (%p843_p5), %s190_s5, 128  }
  0x57   : > { %563 = vsyncadd (%p843_p5), %s190_s5, 4294967168  ;;  %v220_v0 = vld [vmem:[%s193_s19] sm:$0xff]  ;;  %v219_v4 = vld [vmem:[%s184_s6] sm:$0xff]  ;;  %s218_s7 = scalar_lea.vmem [#allocation7], %s362_s18  ;;  %s367_s30 = sshll.u32 %s582_s12, 7 }
  0x58   : > { %v365_v1 = vmul.f32 -1.442695, %v220_v0  ;;  %s244_s20 = sshll.u32 %s218_s7, 4  ;;  %s782_s27 = scalar_lea.hbm %s831_s2, %s367_s30  ;;  %s777_s20 = int_to_ptr.vmem [resolvable:$true] %s244_s20 }
  0x59   : > { %s230_s29 = scalar_lea.sflag [#allocation4], %s763_s16  ;;  %s504_s26 = scalar_lea.vmem %s777_s20, 128 }
  0x5a   : > { %439 = vpow2.f32 %v365_v1  ;;  %p505_p8 = scmp.ne.s32.totalorder %s777_s20, %s504_s26  ;;  %p844_p0 = scmp.ne.s32.totalorder %s836_s22, 0 }
  0x5b   : > { %s594_s12 = smov [#allocation7]  }
  0x5c   : > { %p506_p7 = pnand %p505_p8, %p844_p0  ;;  %s508_s25 = sshll.u32 %s594_s12, 4  ;;  %s509_s25 = int_to_ptr.vmem [resolvable:$false] %s508_s25 }
  0x5d   : > { %s510_s3 = scalar_lea.vmem %s509_s25, 256  ;;  %p511_p10 = scmp.lt.s32.totalorder %s777_s20, %s509_s25 }
  0x5e   : > { %p507_p4 = pneg %p506_p7  ;;  %p512_p12 = scmp.lt.s32.totalorder %s510_s3, %s504_s26 }
  0x60   : > { %p513_p1 = por %p512_p12, %p511_p10 }
  0x62   : > { %p514_p2 = pnand %p513_p1, %p507_p4 }
  0x64   : > { %v440_v2 = vpop.eup %439 }
  0x65   : > { %v224_v3 = vadd.f32 1.0, %v440_v2 }
  0x67   : > { %441 = vrcp.f32 %v224_v3 }
  0x71   : > { %v442_v5 = vpop.eup %441 }
  0x72   : > { %v227_v6 = vmul.f32 %v442_v5, %v219_v4 }
  0x74   : > { %228 = vst [vmem:[%s218_s7] sm:$0xff] %v227_v6 }
  0x75   : > { %517 = shalt.err (!%p514_p2)
}
  0x76   : > { %s518_s8 = scalar_lea.hbm %s782_s27, 128  ;;  %s522_s18 = scalar_lea.hbm %s831_s2, 256 }
  0x77   : > { %p519_p9 = scmp.ne.s32.totalorder %s782_s27, %s518_s8  ;;  %p523_p6 = scmp.lt.u32.totalorder %s782_s27, %s831_s2 }
  0x78   : > { %p524_p13 = scmp.lt.u32.totalorder %s522_s18, %s518_s8  ;;  %p526_p8 = scmp.lt.u32.totalorder %s518_s8, %s782_s27 }
  0x79   : > { %p520_p11 = pnand %p519_p9, %p844_p0 }
  0x7a   : > { %p525_p5 = por %p524_p13, %p523_p6 }
  0x7b   : > { %p521_p3 = pneg %p520_p11 }
  0x7c   : > { %p527_p7 = por %p526_p8, %p525_p5 }
  0x7e   : > { %p528_p4 = pnand %p527_p7, %p521_p3 }
  0x80   : > { %531 = shalt.err (!%p528_p4)
}
  0x81   : > { %376 = dma.vmem_to_hbm [thread:$0]  (%p844_p0), %s777_s20, 128, %s782_s27, %s230_s29  }
  0x82 PF: > { %s256_s5 = sand.u32 1, %s570_s9   ;;  %p845_p10 = scmp.ne.s32.totalorder %s837_s24, 0 }
  0x83   : > { %p846_p12 = scmp.ge.s32.totalorder %s590_s14, 2  ;;  %s257_s19 = scalar_lea.sflag [#allocation4], %s256_s5 }
  0x85   : > { %p386_p1 = pnand %p846_p12, %p845_p10 }
  0x87   : > { %565 = dma.done.wait (!%p386_p1), %s257_s19, 128  }
  0x88   : > { %567 = vsyncadd (!%p386_p1), %s257_s19, 4294967168  ;;  %s21_s14 = sadd.s32 1, %s590_s14   ;;  %s847_s9 = smov %s574_s10 }
  0x89   : > { %p18_p2 = scmp.ge.s32.totalorder %s21_s14, 4   ;;  %s848_s10 = smov %s578_s11 }
  0x8a   : > { %s849_s11 = smov %s666_s23  ;;  %s850_s12 = smov %s586_s13 }
  0x8b   : > { %s851_s13 = smov %s853_s17  ;;  %20 = sbr.rel (!%p18_p2) target bundleno = 8 (0x8), region = 86 }
  0x92   :  { %262 = vsyncpa [#allocation3], 1 }
  0x93   :  { %264 = vsyncpa [#allocation3 + $0x1], 1 }
  0x94   :  { %265 = vsyncpa [#allocation6], 1 }
  0x95   :  { %267 = vsyncpa [#allocation6 + $0x1], 1 }
  0x96   :  { %268 = vsyncpa [#allocation4], 1 }
  0x97   :  { %270 = vsyncpa [#allocation4 + $0x1], 1 }

</bundles_post_ra>
